<compile_context>
chip_gen: v6e
topology: v6e:2x2x1
jax: 0.10.0
libtpu: 0.0.40
codegen_flags: <defaults>
</compile_context>

<pallas_src>
import jax
import jax.numpy as jnp
from jax import lax
from jax.experimental import pallas as pl
from jax.experimental.pallas import tpu as pltpu

_BN_EPS = 1e-5
_LANE = 128


def _round_up(v, m):
    return (v + m - 1) // m * m


def _choose_tile(total, target):
    """Largest multiple of 128 that divides `total` (a multiple of 128) and is
    <= target.  Choosing a divisor avoids streaming zero-padded W bytes."""
    best = _LANE
    t = _LANE
    limit = min(target, total)
    while t <= limit:
        if total % t == 0:
            best = t
        t += _LANE
    return best


def _bn_relu_epilogue(y, gb_ref, o_ref):
    """BN(training, batch stats, biased var) + ReLU on a (N, tile_f) f32 tile."""
    inv_n = 1.0 / y.shape[0]
    mean = jnp.sum(y, axis=0, keepdims=True) * inv_n
    centered = y - mean
    # Two-pass (centered) biased variance — free at N=8, better numerics than
    # E[y^2] - mean^2 and matches PyTorch's centered computation.
    var = jnp.sum(centered * centered, axis=0, keepdims=True) * inv_n
    inv_std = lax.rsqrt(var + _BN_EPS)          # EUP slot, effectively free
    gamma = gb_ref[0:1, :]                      # static slices: views, no copy
    beta = gb_ref[1:2, :]
    o_ref[...] = jnp.maximum(centered * (inv_std * gamma) + beta,
                             0.0).astype(o_ref.dtype)


def _kernel_single_k(x_ref, w_ref, gb_ref, o_ref):
    """grid=(n_f,): the whole reduction fits one tile -> no accumulator scratch,
    no zero-init, no predicated regions."""
    y = jnp.dot(x_ref[...], w_ref[...], preferred_element_type=jnp.float32)
    _bn_relu_epilogue(y, gb_ref, o_ref)


def _kernel_multi_k(x_ref, w_ref, gb_ref, o_ref, acc_ref):
    """grid=(n_f, n_k): K reduction with a resident f32 accumulator.

    x_ref is the full (n_k, N, tile_k) input, VMEM-resident across the whole
    grid (constant index_map -> DMA'd once); the k-chunk is a leading-axis
    dynamic index, so only W streams from HBM.
    """
    k = pl.program_id(1)

    @pl.when(k == 0)
    def _():
        acc_ref[...] = jnp.zeros_like(acc_ref)

    acc_ref[...] += jnp.dot(x_ref[k], w_ref[...],
                            preferred_element_type=jnp.float32)

    @pl.when(k == pl.num_programs(1) - 1)
    def _():
        _bn_relu_epilogue(acc_ref[...], gb_ref, o_ref)


def linear_bn_relu(x, w, b, gamma, beta, *, tile_f=512, max_tile_k=2048,
                   matmul_dtype=None):
    """Fused Linear -> BatchNorm1d(training) -> ReLU.

    x:      (N, in_features)
    w:      (in_features, out_features)   (pre-transposed nn.Linear weight)
    b:      (out_features,)  Linear bias.  Accepted for API parity but unused:
            BN subtracts the per-feature batch mean, so the bias cancels exactly.
    gamma:  (out_features,)  BN weight
    beta:   (out_features,)  BN bias
    matmul_dtype: optional dtype (e.g. jnp.bfloat16) to cast x/W to before the
            matmul; accumulation stays f32, BN math stays f32.  Halves W HBM
            traffic on this weight-streaming-bound op.
    """
    N, K = x.shape
    Kw, F = w.shape
    assert Kw == K, "weight must be (in_features, out_features)"
    out_dtype = x.dtype

    del b  # Cancels under BatchNorm's mean subtraction: output is independent of it.

    # Stack gamma/beta into one (2, F) f32 array -> a single tiny DMA per tile.
    gb = jnp.stack([gamma.reshape(F).astype(jnp.float32),
                    beta.reshape(F).astype(jnp.float32)], axis=0)

    if matmul_dtype is not None:
        x = x.astype(matmul_dtype)
        w = w.astype(matmul_dtype)

    # ---- Feature (output) tiling: lane-dense, 128-multiple divisor of f_pad.
    # Cap at f_pad//2 when possible so the "parallel" axis keeps >= 2 tiles
    # (2-TensorCore sharding on v7x).
    f_pad = _round_up(F, _LANE)
    tile_f = _choose_tile(f_pad, min(tile_f, max(_LANE, f_pad // 2)))
    if f_pad != F:
        w = jnp.pad(w, ((0, 0), (0, f_pad - F)))
        gb = jnp.pad(gb, ((0, 0), (0, f_pad - F)))
    n_f = f_pad // tile_f

    # ---- Reduction (K) tiling: big tiles for DMA row contiguity; x is tiny and
    # made fully VMEM-resident so only W streams from HBM.
    if K <= max_tile_k:
        tile_k, k_pad, n_k = K, K, 1
    else:
        k_pad = _round_up(K, _LANE)
        tile_k = _choose_tile(k_pad, max_tile_k)
        if k_pad != K:
            x = jnp.pad(x, ((0, 0), (0, k_pad - K)))
            w = jnp.pad(w, ((0, k_pad - K), (0, 0)))
        n_k = k_pad // tile_k
        # (N, k_pad) -> (n_k, N, tile_k): the k-chunk becomes a cheap
        # leading-axis index into the resident VMEM copy of x.
        x = x.reshape(N, n_k, tile_k).transpose(1, 0, 2)

    if n_k == 1:
        grid = (n_f,)
        in_specs = [
            pl.BlockSpec((N, k_pad), lambda j: (0, 0)),           # x (resident)
            pl.BlockSpec((k_pad, tile_f), lambda j: (0, j)),      # W (streamed)
            pl.BlockSpec((2, tile_f), lambda j: (0, j)),          # gamma/beta
        ]
        out_spec = pl.BlockSpec((N, tile_f), lambda j: (0, j))
        kernel = _kernel_single_k
        scratch = []
        dim_sem = ("parallel",)
    else:
        grid = (n_f, n_k)
        in_specs = [
            pl.BlockSpec((n_k, N, tile_k), lambda j, k: (0, 0, 0)),  # x (resident)
            pl.BlockSpec((tile_k, tile_f), lambda j, k: (k, j)),     # W (streamed)
            pl.BlockSpec((2, tile_f), lambda j, k: (0, j)),          # gamma/beta
        ]
        out_spec = pl.BlockSpec((N, tile_f), lambda j, k: (0, j))
        kernel = _kernel_multi_k
        scratch = [pltpu.VMEM((N, tile_f), jnp.float32)]             # f32 acc
        dim_sem = ("parallel", "arbitrary")  # BN is per-feature: feature tiles
        #                                      independent; K reduction last.

    out_padded = pl.pallas_call(
        kernel,
        out_shape=jax.ShapeDtypeStruct((N, f_pad), out_dtype),
        grid_spec=pltpu.PrefetchScalarGridSpec(
            num_scalar_prefetch=0,
            grid=grid,
            in_specs=in_specs,
            out_specs=out_spec,
            scratch_shapes=scratch,
        ),
        compiler_params=pltpu.CompilerParams(
            dimension_semantics=dim_sem,
            # Worst case at defaults: 2 x 4 MiB W buffers + resident x + small
            # accumulators ~= 9 MiB.  32 MiB raises v5e's 16 MiB default scoped
            # budget (headroom for bigger user tiles) while staying well within
            # v6e's 128 MiB and v7x's 64 MiB physical VMEM.
            vmem_limit_bytes=32 * 1024 * 1024,
        ),
    )(x, w, gb)

    if f_pad != F:
        out_padded = out_padded[:, :F]
    return out_padded


if __name__ == "__main__":
    # TODO(synk): BatchNorm1d running_mean/running_var momentum buffer updates
    # (training-mode side effect) are not emitted; they do not affect the output.

    def _reference(x, w, b, gamma, beta):
        y = jnp.dot(x, w, precision=lax.Precision.HIGHEST) + b[None, :]
        mean = jnp.mean(y, axis=0, keepdims=True)
        var = jnp.mean((y - mean) ** 2, axis=0, keepdims=True)
        return jnp.maximum((y - mean) / jnp.sqrt(var + _BN_EPS) * gamma[None, :]
                           + beta[None, :], 0.0)

    key = jax.random.PRNGKey(0)

    # ---- Small shape consistent with the module: batch=8, 32 -> 64 features.
    N, K, F = 8, 32, 64
    kx, kw, kb, kg, kbt = jax.random.split(key, 5)
    x = jax.random.normal(kx, (N, K), dtype=jnp.float32)
    bound = 1.0 / (K ** 0.5)
    w = jax.random.uniform(kw, (K, F), minval=-bound, maxval=bound,
                           dtype=jnp.float32)
    b = jax.random.uniform(kb, (F,), minval=-bound, maxval=bound,
                           dtype=jnp.float32)
    gamma = 1.0 + 0.1 * jax.random.normal(kg, (F,), dtype=jnp.float32)
    beta = 0.1 * jax.random.normal(kbt, (F,), dtype=jnp.float32)

    out = linear_bn_relu(x, w, b, gamma, beta)
    jax.block_until_ready(out)
    ref = _reference(x, w, b, gamma, beta)
    assert out.shape == ref.shape, "shape mismatch vs reference (small)"
    assert jnp.allclose(out, ref, atol=1e-4, rtol=1e-4), "mismatch (small shape)"

    # ---- Larger shape exercising the multi-K accumulator path (grid (2, 2)).
    N2, K2, F2 = 8, 2560, 256
    k2x, k2w, k2b, k2g, k2bt = jax.random.split(jax.random.PRNGKey(1), 5)
    x2 = jax.random.normal(k2x, (N2, K2), dtype=jnp.float32)
    bound2 = 1.0 / (K2 ** 0.5)
    w2 = jax.random.uniform(k2w, (K2, F2), minval=-bound2, maxval=bound2,
                            dtype=jnp.float32)
    b2 = jax.random.uniform(k2b, (F2,), minval=-bound2, maxval=bound2,
                            dtype=jnp.float32)
    gamma2 = 1.0 + 0.1 * jax.random.normal(k2g, (F2,), dtype=jnp.float32)
    beta2 = 0.1 * jax.random.normal(k2bt, (F2,), dtype=jnp.float32)

    out2 = linear_bn_relu(x2, w2, b2, gamma2, beta2)
    jax.block_until_ready(out2)
    ref2 = _reference(x2, w2, b2, gamma2, beta2)
    assert out2.shape == ref2.shape, "shape mismatch vs reference (multi-K)"
    assert jnp.allclose(out2, ref2, atol=2e-3, rtol=2e-3), "mismatch (multi-K)"

    # ---- bf16-weight path (halves W HBM traffic on this memory-bound op).
    out_bf16 = linear_bn_relu(x, w, b, gamma, beta, matmul_dtype=jnp.bfloat16)
    jax.block_until_ready(out_bf16)
    xb = x.astype(jnp.bfloat16).astype(jnp.float32)
    wb = w.astype(jnp.bfloat16).astype(jnp.float32)
    ref_bf16 = _reference(xb, wb, b, gamma, beta)
    assert out_bf16.dtype == jnp.float32
    assert jnp.allclose(out_bf16, ref_bf16, atol=1e-2, rtol=1e-2), "mismatch (bf16)"

    print("KERNEL_OK")
</pallas_src>

<mosaic_0001>
module attributes {stable_mosaic.version = 11 : i64} {
  func.func @_kernel_single_k(%arg0: i32, %arg1: memref<8x32xf32, #tpu.memory_space<vmem>>, %arg2: memref<32x128xf32, #tpu.memory_space<vmem>>, %arg3: memref<2x128xf32, #tpu.memory_space<vmem>>, %arg4: memref<8x128xf32, #tpu.memory_space<vmem>>) attributes {dimension_semantics = [#tpu.dimension_semantics<parallel>], iteration_bounds = array<i64: 1>, scalar_prefetch = 0 : i64, scratch_operands = 0 : i64, tpu.core_type = #tpu.core_type<tc>, window_params = [{pipeline_mode = #tpu.pipeline_mode<synchronous>, transform_indices = @transform_0, window_bounds = array<i64: 8, 32>}, {transform_indices = @transform_1, window_bounds = array<i64: 32, 128>}, {transform_indices = @transform_2, window_bounds = array<i64: 2, 128>}, {transform_indices = @transform_3, window_bounds = array<i64: 8, 128>}]} {
    %c0 = arith.constant 0 : index
    %c0_0 = arith.constant 0 : index
    %0 = vector.load %arg1[%c0, %c0_0] : memref<8x32xf32, #tpu.memory_space<vmem>>, vector<8x32xf32>
    %c0_1 = arith.constant 0 : index
    %c0_2 = arith.constant 0 : index
    %1 = vector.load %arg2[%c0_1, %c0_2] : memref<32x128xf32, #tpu.memory_space<vmem>>, vector<32x128xf32>
    %cst = arith.constant dense<0.000000e+00> : vector<8x128xf32>
    %2 = tpu.matmul %0, %1, %cst {dimension_numbers = #tpu.dot_dimension_numbers<[1], [0], [0], [1], [0, 0, 1, 1], [], []>} : vector<8x32xf32>, vector<32x128xf32>, vector<8x128xf32> -> vector<8x128xf32>
    %cst_3 = arith.constant dense<0.000000e+00> : vector<128xf32>
    %3 = vector.multi_reduction <add>, %2, %cst_3 [0] : vector<8x128xf32> to vector<128xf32>
    %4 = vector.shape_cast %3 : vector<128xf32> to vector<1x128xf32>
    %cst_4 = arith.constant 1.250000e-01 : f32
    %5 = vector.broadcast %cst_4 : f32 to vector<1x128xf32>
    %6 = arith.mulf %4, %5 : vector<1x128xf32>
    %7 = vector.broadcast %6 : vector<1x128xf32> to vector<8x128xf32>
    %8 = arith.subf %2, %7 : vector<8x128xf32>
    %9 = arith.mulf %8, %8 : vector<8x128xf32>
    %cst_5 = arith.constant dense<0.000000e+00> : vector<128xf32>
    %10 = vector.multi_reduction <add>, %9, %cst_5 [0] : vector<8x128xf32> to vector<128xf32>
    %11 = vector.shape_cast %10 : vector<128xf32> to vector<1x128xf32>
    %cst_6 = arith.constant 1.250000e-01 : f32
    %12 = vector.broadcast %cst_6 : f32 to vector<1x128xf32>
    %13 = arith.mulf %11, %12 : vector<1x128xf32>
    %cst_7 = arith.constant 9.99999974E-6 : f32
    %14 = vector.broadcast %cst_7 : f32 to vector<1x128xf32>
    %15 = arith.addf %13, %14 : vector<1x128xf32>
    %16 = math.rsqrt %15 : vector<1x128xf32>
    %c0_8 = arith.constant 0 : index
    %c0_9 = arith.constant 0 : index
    %17 = vector.load %arg3[%c0_8, %c0_9] : memref<2x128xf32, #tpu.memory_space<vmem>>, vector<1x128xf32>
    %c1 = arith.constant 1 : index
    %c0_10 = arith.constant 0 : index
    %18 = vector.load %arg3[%c1, %c0_10] : memref<2x128xf32, #tpu.memory_space<vmem>>, vector<1x128xf32>
    %19 = arith.mulf %16, %17 : vector<1x128xf32>
    %20 = vector.broadcast %19 : vector<1x128xf32> to vector<8x128xf32>
    %21 = arith.mulf %8, %20 : vector<8x128xf32>
    %22 = vector.broadcast %18 : vector<1x128xf32> to vector<8x128xf32>
    %23 = arith.addf %21, %22 : vector<8x128xf32>
    %cst_11 = arith.constant 0.000000e+00 : f32
    %24 = vector.broadcast %cst_11 : f32 to vector<8x128xf32>
    %25 = arith.maximumf %23, %24 : vector<8x128xf32>
    %c0_12 = arith.constant 0 : index
    %c0_13 = arith.constant 0 : index
    %26 = vector.load %arg4[%c0_12, %c0_13] : memref<8x128xf32, #tpu.memory_space<vmem>>, vector<8x128xf32>
    tpu.vector_store %arg4[%c0_12, %c0_13], %25 {strides = array<i32>} : memref<8x128xf32, #tpu.memory_space<vmem>>, vector<8x128xf32>,
    return
  }
  func.func @transform_0(%arg0: i32) -> (i32, i32) {
    %c0_i32 = arith.constant 0 : i32
    %c0_i32_0 = arith.constant 0 : i32
    %c0_i32_1 = arith.constant 0 : i32
    return %c0_i32, %c0_i32_0 : i32, i32
  }
  func.func @transform_1(%arg0: i32) -> (i32, i32) {
    %c0_i32 = arith.constant 0 : i32
    %c0_i32_0 = arith.constant 0 : i32
    return %c0_i32, %arg0 : i32, i32
  }
  func.func @transform_2(%arg0: i32) -> (i32, i32) {
    %c0_i32 = arith.constant 0 : i32
    %c0_i32_0 = arith.constant 0 : i32
    return %c0_i32, %arg0 : i32, i32
  }
  func.func @transform_3(%arg0: i32) -> (i32, i32) {
    %c0_i32 = arith.constant 0 : i32
    %c0_i32_0 = arith.constant 0 : i32
    return %c0_i32, %arg0 : i32, i32
  }
}

</mosaic_0001>

<bundles_post_ra>
// kernel: tpu_custom_call.1
= control target key start
LH: loop header
LB: loop body
LE: loop exit
PB: predicated region body
PF: predicated region fallthrough
CT: control target
= control target key end

     0   :  { %8 = vsyncpa [#allocation3], 0  ;;  %s304_s0 = inlined_call_operand.hbm [shape: f32[8,32], index: 0, kind: input, shape index: {}]   ;;  %s305_s1 = inlined_call_operand.hbm [shape: f32[32,128], index: 1, kind: input, shape index: {}]   ;;  %s306_s2 = inlined_call_operand.vmem [shape: f32[2,128], index: 2, kind: input, shape index: {}]   ;;  %s307_s3 = inlined_call_operand.hbm [shape: f32[8,128], index: 3, kind: output, shape index: {}]  }
   0x1   :  { %9 = vsyncpa [#allocation6], 0 }
   0x2   :  { %10 = vsyncpa [#allocation4], 0  ;;  %s262_s12 = smov [#allocation2]   ;;  %s263_s14 = smov [#allocation5]  }
   0x3   :  { %s17_s13 = sshll.u32 %s262_s12, 4  ;;  %s26_s15 = sshll.u32 %s263_s14, 4  ;;  %s18_s13 = int_to_ptr.vmem [resolvable:$true] %s17_s13  ;;  %s27_s15 = int_to_ptr.vmem [resolvable:$true] %s26_s15 }
   0x4   :  { %s204_s16 = scalar_lea.vmem %s18_s13, 128  ;;  %p209_p1 = scmp.lt.s32.totalorder %s18_s13, %s18_s13 }
   0x5   :  { %p205_p0 = scmp.ne.s32.totalorder %s18_s13, %s204_s16  ;;  %p210_p2 = scmp.lt.s32.totalorder %s204_s16, %s204_s16 }
   0x7   :  { %p211_p3 = por %p210_p2, %p209_p1 }
   0x9   :  { %p212_p4 = pnand %p211_p3, %p205_p0 }
   0xb   :  { %215 = shalt.err (!%p212_p4)
}
   0xc   :  { %20 = dma.hbm_to_vmem [thread:$0]  %s304_s0, 128, %s18_s13, [#allocation3]  }
   0xd   :  { %s224_s19 = scalar_lea.vmem %s27_s15, 512  ;;  %p229_p6 = scmp.lt.s32.totalorder %s27_s15, %s27_s15 }
   0xe   :  { %p225_p5 = scmp.ne.s32.totalorder %s27_s15, %s224_s19  ;;  %p230_p7 = scmp.lt.s32.totalorder %s224_s19, %s224_s19 }
  0x10   :  { %p231_p8 = por %p230_p7, %p229_p6 }
  0x12   :  { %p232_p9 = pnand %p231_p8, %p225_p5 }
  0x14   :  { %235 = shalt.err (!%p232_p9)
}
  0x15   :  { %s264_s20 = smov 128   ;;  %s265_s21 = smov 8  }
  0x16   :  { %32 = dma.hbm_to_vmem [thread:$0]  %s305_s1, 512, %s27_s15, [#allocation6], %s264_s20, %s264_s20, %s265_s21  }
  0x17   :  { %256 = dma.done.wait [#allocation3], 128  }
  0x18   :  { %257 = vsyncadd [#allocation3], 4294967168 }
  0x19   :  { %258 = dma.done.wait [#allocation6], 512  }
  0x1a   :  { %259 = vsyncadd [#allocation6], 4294966784  ;;  %v266_v0 = vmov 0.0   ;;  %vm267_vm0 = vmmov 0   ;;  %v45_v1 = vld [vmem:[#allocation5 + $0x18] sm:$0xff]  ;;  %v44_v2 = vld [vmem:[#allocation5 + $0x10] sm:$0xff]  ;;  %v141_v25 = vlaneseq }
  0x1b   :  { %176 = vmatprep.subr.mxu0 %v266_v0  ;;  %184 = vmatprep.mubr.msk.f32.mxu0 %vm267_vm0, %v266_v0  ;;  %v43_v3 = vld [vmem:[#allocation5 + $0x8] sm:$0xff]  ;;  %v42_v4 = vld [vmem:[#allocation5] sm:$0xff]  ;;  %v41_v5 = vld [vmem:[#allocation2] sm:$0xff]  ;;  %vm46_vm1 = vcmask 261120   ;;  %s268_s26 = smov [#allocation7]  }
  0x1c   :  { %177 = vmatpush3.msra.mxu0 %v45_v1  ;;  %v142_v26 = vshrl.u32 %v141_v25, 7  ;;  %v138_v27 = vld [vmem:[%s306_s2] sm:$0x1]  ;;  %v170_v32 = vld [vmem:[%s306_s2 + $0x1] ss:$0 sm:$0xff]  ;;  %s159_s27 = sshll.u32 %s268_s26, 4  ;;  %s160_s27 = int_to_ptr.vmem [resolvable:$true] %s159_s27 }
  0x1d   :  { %178 = vmatprep.subr.mxu0 %v266_v0  ;;  %s236_s28 = scalar_lea.vmem %s160_s27, 128  ;;  %p241_p11 = scmp.lt.s32.totalorder %s160_s27, %s160_s27 }
  0x1e   :  { %179 = vmatpush3.msra.mxu0 %v44_v2  ;;  %v143_v28 = vsub.s32 0, %v142_v26  ;;  %p237_p10 = scmp.ne.s32.totalorder %s160_s27, %s236_s28  ;;  %p242_p12 = scmp.lt.s32.totalorder %s236_s28, %s236_s28 }
  0x1f   :  { %180 = vmatprep.subr.mxu0 %v266_v0 }
  0x20   :  { %181 = vmatpush3.msra.mxu0 %v43_v3  ;;  %p243_p13 = por %p242_p12, %p241_p11 }
  0x21   :  { %182 = vmatprep.subr.mxu0 %v266_v0 }
  0x22   :  { %183 = vmatpush3.msra.mxu0 %v42_v4  ;;  %p244_p0 = pnand %p243_p13, %p237_p10 }
  0x23   :  { %185 = vmatmul.mubr.msk.f32.vlgmr.msra.gmra.mxu0 %vm46_vm1, %v41_v5 }
  0xe3   :  { %v116_v6 = vpop.f32.mrf.mxu0 }
  0xe4   :  { %v120_v7 = vrot.slane %v116_v6, 4 }
  0xe5   :  { %v186_v8 = vpop.f32.mrf.mxu0 }
  0xe6   :  { %v121_v9 = vadd.f32 %v120_v7, %v116_v6 }
  0xe8   :  { %v122_v10 = vrot.slane %v121_v9, 2 }
  0xea   :  { %v123_v11 = vadd.f32 %v122_v10, %v121_v9 }
  0xec   :  { %v124_v12 = vrot.slane %v123_v11, 1 }
  0xee   :  { %v125_v13 = vadd.f32 %v124_v12, %v123_v11 }
  0xf0   :  { %v126_v14 = vmul.f32 0.125, %v125_v13 }
  0xf2   :  { %v127_v15 = vsub.f32 %v116_v6, %v126_v14 }
  0xf4   :  { %v128_v16 = vmul.f32 %v127_v15, %v127_v15 }
  0xf6   :  { %v129_v17 = vrot.slane %v128_v16, 4 }
  0xf8   :  { %v130_v18 = vadd.f32 %v129_v17, %v128_v16 }
  0xfa   :  { %v131_v19 = vrot.slane %v130_v18, 2 }
  0xfc   :  { %v132_v20 = vadd.f32 %v131_v19, %v130_v18 }
  0xfe   :  { %v133_v21 = vrot.slane %v132_v20, 1 }
 0x100   :  { %v134_v22 = vadd.f32 %v133_v21, %v132_v20 }
 0x102   :  { %v135_v23 = vmul.f32 0.125, %v134_v22 }
 0x104   :  { %v136_v24 = vadd.f32 1e-05, %v135_v23 }
 0x106   :  { %194 = vrsqrt.f32 %v136_v24 }
 0x113   :  { %v195_v29 = vpop.eup %194 }
 0x114   :  { %v140_v30 = vmul.f32 %v195_v29, %v138_v27 }
 0x116   :  { %v144_v31 = vrot.slane %v140_v30, %v143_v28 }
 0x118   :  { %v145_v33 = vmul.f32 %v144_v31, %v127_v15 }
 0x11a   :  { %v150_v34 = vadd.f32 %v170_v32, %v145_v33 }
 0x11c   :  { %v151_v35 = vmax.f32 %v150_v34, 0.0 }
 0x11e   :  { %152 = vst [vmem:[#allocation7] sm:$0xff] %v151_v35 }
 0x11f   :  { %247 = shalt.err (!%p244_p0)
}
 0x120   :  { %162 = dma.vmem_to_hbm [thread:$0]  %s160_s27, 128, %s307_s3, [#allocation4]  }
 0x121   :  { %260 = dma.done.wait [#allocation4], 128  }
 0x122   :  { %261 = vsyncadd [#allocation4], 4294967168 }
 0x123   :  { %166 = vsyncpa [#allocation3], 1 }
 0x124   :  { %167 = vsyncpa [#allocation6], 1 }
 0x125   :  { %168 = vsyncpa [#allocation4], 1 }

</bundles_post_ra>
